<compile_context>
chip_gen: v7x
topology: tpu7x:2x2x1
jax: 0.10.0
libtpu: 0.0.40
codegen_flags: <defaults>
</compile_context>

<pallas_src>
import functools

import jax
import jax.numpy as jnp
from jax.experimental import pallas as pl
from jax.experimental.pallas import tpu as pltpu


# VMEM accounting: budget for the pipelined blocks + f32 temporaries of one
# grid step, and the scoped-VMEM limit handed to Mosaic.  48 MiB leaves
# headroom inside v7x's 64 MiB physical VMEM and is well under v5e/v6e's
# 128 MiB.
_VMEM_BLOCK_BUDGET = 32 << 20
_VMEM_LIMIT_BYTES = 48 << 20


def _bytes_per_row(c, hw, img_dtype, mask_dtype):
    """Approx. VMEM bytes one batch row costs per pipelined grid step."""
    img_b = jnp.dtype(img_dtype).itemsize
    mask_b = jnp.dtype(mask_dtype).itemsize
    # Double-buffered input/output blocks: image, mask, bf16 pred, (.,2) stats.
    dbuf = 2 * (c * hw * img_b + hw * mask_b + hw * 2 + 2 * 4)
    # f32 in-kernel temporaries (logit, pred, err) + headroom.
    temps = 4 * hw * 4
    return dbuf + temps


def _choose_tile_n(n, c, hw, img_dtype, mask_dtype):
    """Rows per grid step, derived from the VMEM budget (not a fixed constant)."""
    per_row = _bytes_per_row(c, hw, img_dtype, mask_dtype)
    fit = _VMEM_BLOCK_BUDGET // per_row
    if fit < 8:
        # TODO(synk): add a second grid axis over HW for images so large that
        # even an 8-row slab exceeds the VMEM budget.
        raise NotImplementedError(
            "Image rows too large for the VMEM budget; HW tiling not implemented.")
    if fit >= n and n < 32:
        return n                       # single full-dim block (legal for any n)
    tile = min(fit, n)
    if n >= 32:
        tile = min(tile, -(-n // 2))   # >= 2 batch steps -> v7x megacore shards
    if tile >= 16:
        tile = (tile // 16) * 16       # bf16-sublane-friendly multiple of 16
    else:
        tile = 8
    return tile


def _basemodel_kernel(w_ref, b_ref, img_ref, mask_ref, pred_ref, stats_ref,
                      *, num_channels, hw):
    """One grid step processes a (tile_n, ...) slab of the batch.

    w_ref    : SMEM (1, C)           channel-mix weights
    b_ref    : SMEM (1, 1)           bias
    img_ref  : VMEM (tile_n, C*HW)   image, channels concatenated on lanes
    mask_ref : VMEM (tile_n, HW)     ground-truth mask (any float/int dtype)
    pred_ref : VMEM (tile_n, HW)     bf16 sigmoid prediction (halved writeback)
    stats_ref: VMEM (tile_n, 2)      [per-sample SSE, per-sample sum(pred)]
    """
    # Channel mix on the VPU: C lane-aligned, lane-dense FMAs (static slices at
    # c*hw with hw % 128 == 0), no degenerate MXU dispatch.  Upcast per slab so
    # all arithmetic runs in f32 (v5e has no bf16 VPU path).
    logit = w_ref[0, 0] * img_ref[:, 0:hw].astype(jnp.float32)
    for c in range(1, num_channels):                       # static unroll
        logit = logit + w_ref[0, c] * img_ref[:, c * hw:(c + 1) * hw].astype(jnp.float32)
    logit = logit + b_ref[0, 0]

    pred = jax.nn.sigmoid(logit)                           # EUP exp + recip
    pred_ref[...] = pred.astype(pred_ref.dtype)            # bf16 store

    err = pred - mask_ref[...].astype(jnp.float32)
    # Per-row lane reduces only; the tiny cross-row reduction is finished in
    # JAX, so no resident accumulator and the batch axis stays "parallel".
    sse = jnp.sum(err * err, axis=-1, keepdims=True)
    lab = jnp.sum(pred, axis=-1, keepdims=True)
    stats_ref[...] = jnp.concatenate([sse, lab], axis=-1)  # one merged store


@jax.jit
def _run_kernel(w, b, image_flat, mask_flat):
    n, chw = image_flat.shape
    hw = mask_flat.shape[-1]
    c = chw // hw

    tile_n = _choose_tile_n(n, c, hw, image_flat.dtype, mask_flat.dtype)
    grid = (pl.cdiv(n, tile_n),)

    kernel = functools.partial(_basemodel_kernel, num_channels=c, hw=hw)

    pred, stats = pl.pallas_call(
        kernel,
        out_shape=(
            jax.ShapeDtypeStruct((n, hw), jnp.bfloat16),   # pred_mask (bf16 writeback)
            jax.ShapeDtypeStruct((n, 2), jnp.float32),     # [SSE, sum(pred)] per sample
        ),
        grid=grid,
        in_specs=[
            pl.BlockSpec(memory_space=pltpu.MemorySpace.SMEM),   # w (1, C)
            pl.BlockSpec(memory_space=pltpu.MemorySpace.SMEM),   # b (1, 1)
            pl.BlockSpec((tile_n, chw), lambda i: (i, 0)),       # image slab
            pl.BlockSpec((tile_n, hw), lambda i: (i, 0)),        # mask slab
        ],
        out_specs=(
            pl.BlockSpec((tile_n, hw), lambda i: (i, 0)),
            pl.BlockSpec((tile_n, 2), lambda i: (i, 0)),
        ),
        compiler_params=pltpu.CompilerParams(
            dimension_semantics=("parallel",),        # batch axis megacore-shardable
            vmem_limit_bytes=_VMEM_LIMIT_BYTES,
        ),
    )(w, b, image_flat, mask_flat)
    return pred, stats


class BaseModelPallas:
    """Pallas realization of the ForensicHub BaseModel forward contract."""

    def __init__(self, in_channels: int):
        # Deterministic synthetic parameters (channel-mix weights + bias).
        self.w = (jnp.arange(in_channels, dtype=jnp.float32)[None, :] + 1.0) * 0.1
        self.b = jnp.zeros((1, 1), dtype=jnp.float32)

    def forward(self, image: jax.Array, mask: jax.Array, **kwargs):
        # image: (N, C, H, W)  |  mask: (N, 1, H, W); any float dtype for both
        # (pass bf16 from the data pipeline to halve HBM read traffic — no
        # wrapper-side cast/copy passes are performed here).
        N, C, H, W = image.shape
        HW = H * W
        # Lane-aligned channel slices and unmasked pred stores need HW % 128.
        # TODO(synk): lane-pad the spatial dim in-kernel for ragged HW.
        assert HW % 128 == 0, "H*W must be a multiple of 128 for lane-dense layout"

        # Free contiguous views; no dtype casts, no padding (no extra HBM passes).
        image_flat = image.reshape(N, C * HW)
        mask_flat = mask.reshape(N, HW)

        pred_flat, stats = _run_kernel(self.w, self.b, image_flat, mask_flat)

        pred_mask = pred_flat.reshape(N, 1, H, W)                 # bf16
        pred_label = stats[:, 1] / jnp.float32(HW)                # (N,), f32
        combined_loss = jnp.sum(stats[:, 0]) / jnp.float32(N * HW)  # exact f32 MSE
        return {
            "backward_loss": combined_loss,
            "pred_mask": pred_mask,
            "pred_label": pred_label,
            "visual_loss": {"combined_loss": combined_loss},
            "visual_image": {"mask": mask, "pred_mask": pred_mask},
        }

    def get_prediction(self, data_dict):
        # Inference path (no grad tracking needed in JAX).
        return self.forward(**data_dict)

    def compute_loss(self, data_dict, output_dict):
        return output_dict["backward_loss"]

    def get_metrics(self, data_dict, output_dict):
        # TODO(synk): real forensic metrics (F1 / AUC) are subclass-specific.
        mse = jnp.mean(
            (output_dict["pred_mask"].astype(jnp.float32)
             - data_dict["mask"].astype(jnp.float32)) ** 2)
        return {"mse": float(mse)}


if __name__ == "__main__":
    key = jax.random.PRNGKey(0)
    k_img, k_mask = jax.random.split(key)

    N, C, H, W = 2, 4, 16, 16
    image = jax.random.normal(k_img, (N, C, H, W), dtype=jnp.float32)
    # Binary mask supplied as bf16 straight from the "data pipeline" (exact).
    mask = (jax.random.uniform(k_mask, (N, 1, H, W)) > 0.5).astype(jnp.bfloat16)

    model = BaseModelPallas(in_channels=C)
    out = model.forward(image=image, mask=mask, label=jnp.zeros((N,), jnp.int32))
    jax.block_until_ready(out["backward_loss"])
    jax.block_until_ready(out["pred_mask"])
    jax.block_until_ready(out["pred_label"])

    # Pure-JAX reference (f32 throughout; kernel consumes f32 image directly).
    mask_f32 = mask.astype(jnp.float32)
    logit = jnp.einsum("oc,nchw->nohw", model.w, image) + model.b[0, 0]
    ref_pred = jax.nn.sigmoid(logit)
    ref_loss = jnp.mean((ref_pred - mask_f32) ** 2)
    ref_label = jnp.mean(ref_pred.reshape(N, -1), axis=-1)

    # pred_mask is stored as bf16 (writeback halved) -> bf16-level tolerance;
    # loss / label are computed in-kernel from the f32 pred -> tight tolerance.
    assert jnp.allclose(out["pred_mask"].astype(jnp.float32), ref_pred, atol=4e-3)
    assert jnp.allclose(out["backward_loss"], ref_loss, atol=1e-5)
    assert jnp.allclose(out["pred_label"], ref_label, atol=1e-5)

    print("KERNEL_OK")
</pallas_src>

<mosaic_0001>
module attributes {stable_mosaic.version = 11 : i64} {
  func.func @_basemodel_kernel(%arg0: i32, %arg1: memref<1x4xf32, #tpu.memory_space<smem>>, %arg2: memref<1x1xf32, #tpu.memory_space<smem>>, %arg3: memref<2x1024xf32, #tpu.memory_space<vmem>>, %arg4: memref<2x256xbf16, #tpu.memory_space<vmem>>, %arg5: memref<2x256xbf16, #tpu.memory_space<vmem>>, %arg6: memref<2x2xf32, #tpu.memory_space<vmem>>) attributes {dimension_semantics = [#tpu.dimension_semantics<parallel>], iteration_bounds = array<i64: 1>, scalar_prefetch = 0 : i64, scratch_operands = 0 : i64, tpu.core_type = #tpu.core_type<tc>, window_params = [{transform_indices = @transform_0, window_bounds = array<i64: 1, 4>}, {transform_indices = @transform_1, window_bounds = array<i64: 1, 1>}, {transform_indices = @transform_2, window_bounds = array<i64: 2, 1024>}, {transform_indices = @transform_3, window_bounds = array<i64: 2, 256>}, {transform_indices = @transform_4, window_bounds = array<i64: 2, 256>}, {transform_indices = @transform_5, window_bounds = array<i64: 2, 2>}]} {
    %c0 = arith.constant 0 : index
    %c0_0 = arith.constant 0 : index
    %0 = memref.load %arg1[%c0, %c0_0] : memref<1x4xf32, #tpu.memory_space<smem>>
    %c0_1 = arith.constant 0 : index
    %c0_2 = arith.constant 0 : index
    %1 = vector.load %arg3[%c0_1, %c0_2] : memref<2x1024xf32, #tpu.memory_space<vmem>>, vector<2x256xf32>
    %2 = vector.broadcast %0 : f32 to vector<2x256xf32>
    %3 = arith.mulf %2, %1 : vector<2x256xf32>
    %c0_3 = arith.constant 0 : index
    %c1 = arith.constant 1 : index
    %4 = memref.load %arg1[%c0_3, %c1] : memref<1x4xf32, #tpu.memory_space<smem>>
    %c0_4 = arith.constant 0 : index
    %c256 = arith.constant 256 : index
    %5 = vector.load %arg3[%c0_4, %c256] : memref<2x1024xf32, #tpu.memory_space<vmem>>, vector<2x256xf32>
    %6 = vector.broadcast %4 : f32 to vector<2x256xf32>
    %7 = arith.mulf %6, %5 : vector<2x256xf32>
    %8 = arith.addf %3, %7 : vector<2x256xf32>
    %c0_5 = arith.constant 0 : index
    %c2 = arith.constant 2 : index
    %9 = memref.load %arg1[%c0_5, %c2] : memref<1x4xf32, #tpu.memory_space<smem>>
    %c0_6 = arith.constant 0 : index
    %c512 = arith.constant 512 : index
    %10 = vector.load %arg3[%c0_6, %c512] : memref<2x1024xf32, #tpu.memory_space<vmem>>, vector<2x256xf32>
    %11 = vector.broadcast %9 : f32 to vector<2x256xf32>
    %12 = arith.mulf %11, %10 : vector<2x256xf32>
    %13 = arith.addf %8, %12 : vector<2x256xf32>
    %c0_7 = arith.constant 0 : index
    %c3 = arith.constant 3 : index
    %14 = memref.load %arg1[%c0_7, %c3] : memref<1x4xf32, #tpu.memory_space<smem>>
    %c0_8 = arith.constant 0 : index
    %c768 = arith.constant 768 : index
    %15 = vector.load %arg3[%c0_8, %c768] : memref<2x1024xf32, #tpu.memory_space<vmem>>, vector<2x256xf32>
    %16 = vector.broadcast %14 : f32 to vector<2x256xf32>
    %17 = arith.mulf %16, %15 : vector<2x256xf32>
    %18 = arith.addf %13, %17 : vector<2x256xf32>
    %c0_9 = arith.constant 0 : index
    %c0_10 = arith.constant 0 : index
    %19 = memref.load %arg2[%c0_9, %c0_10] : memref<1x1xf32, #tpu.memory_space<smem>>
    %20 = vector.broadcast %19 : f32 to vector<2x256xf32>
    %21 = arith.addf %18, %20 : vector<2x256xf32>
    %22 = arith.negf %21 : vector<2x256xf32>
    %23 = math.exp %22 : vector<2x256xf32>
    %cst = arith.constant 1.000000e+00 : f32
    %24 = vector.broadcast %cst : f32 to vector<2x256xf32>
    %25 = arith.addf %24, %23 : vector<2x256xf32>
    %26 = arith.divf %24, %25 : vector<2x256xf32>
    %27 = arith.truncf %26 : vector<2x256xf32> to vector<2x256xbf16>
    %c0_11 = arith.constant 0 : index
    %c0_12 = arith.constant 0 : index
    %28 = vector.load %arg5[%c0_11, %c0_12] : memref<2x256xbf16, #tpu.memory_space<vmem>>, vector<2x256xbf16>
    tpu.vector_store %arg5[%c0_11, %c0_12], %27 {strides = array<i32>} : memref<2x256xbf16, #tpu.memory_space<vmem>>, vector<2x256xbf16>,
    %c0_13 = arith.constant 0 : index
    %c0_14 = arith.constant 0 : index
    %29 = vector.load %arg4[%c0_13, %c0_14] : memref<2x256xbf16, #tpu.memory_space<vmem>>, vector<2x256xbf16>
    %30 = arith.extf %29 : vector<2x256xbf16> to vector<2x256xf32>
    %31 = arith.subf %26, %30 : vector<2x256xf32>
    %32 = arith.mulf %31, %31 : vector<2x256xf32>
    %cst_15 = arith.constant dense<0.000000e+00> : vector<2xf32>
    %33 = vector.multi_reduction <add>, %32, %cst_15 [1] : vector<2x256xf32> to vector<2xf32>
    %34 = vector.shape_cast %33 : vector<2xf32> to vector<2x1xf32>
    %cst_16 = arith.constant dense<0.000000e+00> : vector<2xf32>
    %35 = vector.multi_reduction <add>, %26, %cst_16 [1] : vector<2x256xf32> to vector<2xf32>
    %36 = vector.shape_cast %35 : vector<2xf32> to vector<2x1xf32>
    %37 = tpu.concatenate %34, %36 in 1 : vector<2x1xf32>, vector<2x1xf32> -> vector<2x2xf32>
    %c0_17 = arith.constant 0 : index
    %c0_18 = arith.constant 0 : index
    %38 = vector.load %arg6[%c0_17, %c0_18] : memref<2x2xf32, #tpu.memory_space<vmem>>, vector<2x2xf32>
    tpu.vector_store %arg6[%c0_17, %c0_18], %37 {strides = array<i32>} : memref<2x2xf32, #tpu.memory_space<vmem>>, vector<2x2xf32>,
    return
  }
  func.func @transform_0(%arg0: i32) -> (i32, i32) {
    %c0_i32 = arith.constant 0 : i32
    %c0_i32_0 = arith.constant 0 : i32
    %c0_i32_1 = arith.constant 0 : i32
    return %c0_i32, %c0_i32_0 : i32, i32
  }
  func.func @transform_1(%arg0: i32) -> (i32, i32) {
    %c0_i32 = arith.constant 0 : i32
    %c0_i32_0 = arith.constant 0 : i32
    %c0_i32_1 = arith.constant 0 : i32
    return %c0_i32, %c0_i32_0 : i32, i32
  }
  func.func @transform_2(%arg0: i32) -> (i32, i32) {
    %c0_i32 = arith.constant 0 : i32
    %c0_i32_0 = arith.constant 0 : i32
    return %arg0, %c0_i32 : i32, i32
  }
  func.func @transform_3(%arg0: i32) -> (i32, i32) {
    %c0_i32 = arith.constant 0 : i32
    %c0_i32_0 = arith.constant 0 : i32
    return %arg0, %c0_i32 : i32, i32
  }
  func.func @transform_4(%arg0: i32) -> (i32, i32) {
    %c0_i32 = arith.constant 0 : i32
    %c0_i32_0 = arith.constant 0 : i32
    return %arg0, %c0_i32 : i32, i32
  }
  func.func @transform_5(%arg0: i32) -> (i32, i32) {
    %c0_i32 = arith.constant 0 : i32
    %c0_i32_0 = arith.constant 0 : i32
    return %arg0, %c0_i32 : i32, i32
  }
}

</mosaic_0001>

<bundles_post_ra>
// kernel: _run_kernel.1
= control target key start
LH: loop header
LB: loop body
LE: loop exit
PB: predicated region body
PF: predicated region fallthrough
CT: control target
= control target key end

     0   :  { %12 = vsyncpa [#allocation6], 0  ;;  %s350_s0 = inlined_call_operand.vmem [shape: f32[1,4], index: 0, kind: input, shape index: {}]   ;;  %s351_s1 = inlined_call_operand.<no memory space> [shape: f32[1,1], index: 1, kind: input, shape index: {}]   ;;  %s352_s2 = inlined_call_operand.hbm [shape: f32[2,1024], index: 2, kind: input, shape index: {}]   ;;  %s353_s3 = inlined_call_operand.vmem [shape: bf16[2,256], index: 3, kind: input, shape index: {}]   ;;  %s354_s4 = inlined_call_operand.hbm [shape: bf16[2,256], index: 4, kind: output, shape index: {0}]   ;;  %s355_s5 = inlined_call_operand.hbm [shape: f32[2,2], index: 5, kind: output, shape index: {1}]  }
   0x1   :  { %13 = vsyncpa [#allocation4], 0 }
   0x2   :  { %14 = vsyncpa [#allocation5], 0 }
   0x3   :  { %15 = vsyncpa [#allocation10], 0  ;;  %s22_s20 = sshll.u32 %s350_s0, 4  ;;  %s23_s20 = int_to_ptr.vmem [resolvable:$true] %s22_s20 }
   0x4   :  { %s183_s21 = scalar_lea.vmem %s23_s20, 16  ;;  %p188_p1 = scmp.lt.s32.totalorder %s23_s20, %s23_s20 }
   0x5   :  { %p184_p0 = scmp.ne.s32.totalorder %s23_s20, %s183_s21  ;;  %p189_p2 = scmp.lt.s32.totalorder %s183_s21, %s183_s21 }
   0x7   :  { %p190_p3 = por %p189_p2, %p188_p1 }
   0x9   :  { %p191_p4 = pnand %p190_p3, %p184_p0 }
   0xb   :  { %194 = shalt.err (!%p191_p4)
}
   0xc   :  { %s269_s22 = smov [#allocation3]   ;;  %s270_s23 = smov [#allocation7]  }
   0xd   :  { %25 = dma.vmem_to_smem %s23_s20, 16, %s269_s22, [#allocation6]  }
   0xe   :  { %s34_s24 = sshll.u32 %s270_s23, 4  ;;  %s195_s27 = scalar_lea.hbm %s352_s2, 256  ;;  %s35_s24 = int_to_ptr.vmem [resolvable:$true] %s34_s24 }
   0xf   :  { %p196_p5 = scmp.ne.s32.totalorder %s352_s2, %s195_s27  ;;  %p199_p6 = scmp.lt.u32.totalorder %s195_s27, %s352_s2 }
  0x11   :  { %p201_p7 = pnand %p199_p6, %p196_p5 }
  0x13   :  { %204 = shalt.err (!%p201_p7)
}
  0x14   :  { %s205_s6 = scalar_lea.vmem %s35_s24, 256  ;;  %p210_p9 = scmp.lt.s32.totalorder %s35_s24, %s35_s24 }
  0x15   :  { %p206_p8 = scmp.ne.s32.totalorder %s35_s24, %s205_s6  ;;  %p211_p10 = scmp.lt.s32.totalorder %s205_s6, %s205_s6 }
  0x17   :  { %p212_p11 = por %p211_p10, %p210_p9 }
  0x19   :  { %p213_p12 = pnand %p212_p11, %p206_p8 }
  0x1b   :  { %216 = shalt.err (!%p213_p12)
}
  0x1c   :  { %37 = dma.hbm_to_vmem [thread:$0]  %s352_s2, 256, %s35_s24, [#allocation4]  }
  0x1d   :  { %261 = dma.done.wait [#allocation6], 16  }
  0x1e   :  { %262 = vsyncadd [#allocation6], 4294967280 }
  0x1f   :  { %263 = dma.done.wait [#allocation4], 256  }
  0x20   :  { %264 = vsyncadd [#allocation4], 4294967040 }
  0x21   :  { %46 = sfence }
  0x22   :  { %s47_s9 = sld [smem:[#allocation3]]  ;;  %s167_s10 = sld [smem:[#allocation3 + $0x1]]  ;;  %v48_v0 = vld [vmem:[#allocation7] sm:$0xf]  ;;  %v52_v1 = vld [vmem:[#allocation7 + $0x4] sm:$0xf]  ;;  %v67_v14 = vstv %s351_s1  ;;  %v79_v22 = vlaneseq }
  0x23   :  { %s168_s11 = sld [smem:[#allocation3 + $0x2]]  ;;  %s169_s12 = sld [smem:[#allocation3 + $0x3]]  ;;  %v57_v2 = vld [vmem:[#allocation7 + $0x8] sm:$0xf]  ;;  %v62_v5 = vld [vmem:[#allocation7 + $0xc] sm:$0xf] }
  0x24   :  { %v271_v20 = vmov 1983009808   ;;  %v107_v23 = vld [vmem:[%s353_s3] sm:$0x3]  ;;  %v80_v25 = vshrl.u32 %v79_v22, 7  ;;  %vm122_vm0 = vcmask 1041408  }
  0x25   :  { %v77_v21 = vunpack.c.l.s4 %v271_v20  ;;  %v108_v26 = vunpack.c.l.bf16 %v107_v23  ;;  %v272_v41 = vmov 1966171168   ;;  %s273_s1 = smov [#allocation8]  }
  0x26   :  { %v92_v42 = vunpack.c.l.s4 %v272_v41  ;;  %s143_s3 = sshll.u32 %s273_s1, 4  ;;  %s144_s3 = int_to_ptr.vmem [resolvable:$true] %s143_s3 }
  0x27   :  { %v78_v24 = vunpack.c.0.s8 %v77_v21  ;;  %s217_s16 = scalar_lea.vmem %s144_s3, 32  ;;  %p222_p0 = scmp.lt.s32.totalorder %s144_s3, %s144_s3 }
  0x28   :  { %v49_v3 = vstv %s47_s9  ;;  %v53_v4 = vstv %s167_s10  ;;  %v93_v43 = vunpack.c.0.s8 %v92_v42  ;;  %p218_p13 = scmp.ne.s32.totalorder %s144_s3, %s217_s16  ;;  %p223_p1 = scmp.lt.s32.totalorder %s217_s16, %s217_s16 }
  0x29   :  { %v50_v6 = vmul.f32 %v49_v3, %v48_v0  ;;  %v54_v7 = vmul.f32 %v53_v4, %v52_v1  ;;  %v58_v8 = vstv %s168_s11  ;;  %v63_v10 = vstv %s169_s12 }
  0x2a   :  { %v59_v9 = vmul.f32 %v58_v8, %v57_v2  ;;  %v64_v12 = vmul.f32 %v63_v10, %v62_v5  ;;  %v81_v27 = vsub.s32 %v78_v24, %v80_v25  ;;  %v96_v45 = vsub.s32 %v93_v43, %v80_v25  ;;  %p224_p2 = por %p223_p1, %p222_p0 }
  0x2b   :  { %v55_v11 = vadd.f32 %v54_v7, %v50_v6 }
  0x2c   :  { %p225_p3 = pnand %p224_p2, %p218_p13 }
  0x2d   :  { %v60_v13 = vadd.f32 %v59_v9, %v55_v11 }
  0x2f   :  { %v65_v15 = vadd.f32 %v64_v12, %v60_v13 }
  0x31   :  { %v68_v16 = vadd.f32 %v67_v14, %v65_v15 }
  0x33   :  { %v170_v17 = vmul.f32 -1.442695, %v68_v16 }
  0x35   :  { %179 = vpow2.f32 %v170_v17 }
  0x3f   :  { %v180_v18 = vpop.eup %179 }
  0x40   :  { %v72_v19 = vadd.f32 1.0, %v180_v18 }
  0x42   :  { %181 = vrcp.f32 %v72_v19 }
  0x4c   :  { %v182_v28 = vpop.eup %181 }
  0x4d   :  { %v109_v29 = vsub.f32 %v182_v28, %v108_v26  ;;  %v82_v30 = vrot.slane %v182_v28, %v81_v27 }
  0x4f   :  { %v110_v31 = vmul.f32 %v109_v29, %v109_v29  ;;  %v83_v33 = vcombine.high %v82_v30, %v82_v30  ;;  %v128_v37 = vsel %vm122_vm0, %v82_v30, 0.0 }
  0x51   :  { %v118_v32 = vrot.slane %v110_v31, %v81_v27  ;;  %v129_v38 = vsel %vm122_vm0, %v83_v33, 0.0  ;;  %v171_v44 = vpack.c.bf16 %v83_v33, %v82_v30 }
  0x52   :  { %v130_v40 = vadd.f32 %v129_v38, %v128_v37 }
  0x53   :  { %v119_v34 = vcombine.high %v118_v32, %v118_v32  ;;  %v123_v35 = vsel %vm122_vm0, %v118_v32, 0.0  ;;  %v97_v46 = vrot.slane %v171_v44, %v96_v45 }
  0x55   :  { %v124_v36 = vsel %vm122_vm0, %v119_v34, 0.0  ;;  %172 = vst.sshfl [vmem:[#allocation8] sm:$0x5 pattern:$0x73625140] %v97_v46 }
  0x56   :  { %v125_v39 = vadd.f32 %v124_v36, %v123_v35 }
  0x58   :  { %126 = vadd.xlane.f32.xlu0 %v125_v39 }
  0x5c   :  { %131 = vadd.xlane.f32.xlu0 %v130_v40 }
  0x5d   :  { %228 = shalt.err (!%p225_p3)
}
  0x5e   :  { %s229_s19 = scalar_lea.hbm %s354_s4, 32 }
  0x5f   :  { %p230_p4 = scmp.ne.s32.totalorder %s354_s4, %s229_s19  ;;  %p233_p5 = scmp.lt.u32.totalorder %s229_s19, %s354_s4 }
  0x61   :  { %p235_p6 = pnand %p233_p5, %p230_p4 }
  0x63   :  { %238 = shalt.err (!%p235_p6)
}
  0x64   :  { %146 = dma.vmem_to_hbm [thread:$0]  %s144_s3, 32, %s354_s4, [#allocation5]   ;;  %vm133_vm1 = vcmask 7168   ;;  %vm135_vm2 = vcmask 9216  }
  0x65   :  { %s274_s26 = smov [#allocation9]  }
  0x66   :  { %s153_s27 = sshll.u32 %s274_s26, 4  ;;  %s154_s27 = int_to_ptr.vmem [resolvable:$true] %s153_s27 }
  0x67   :  { %s239_s28 = scalar_lea.vmem %s154_s27, 32  ;;  %p244_p8 = scmp.lt.s32.totalorder %s154_s27, %s154_s27 }
  0x68   :  { %p240_p7 = scmp.ne.s32.totalorder %s154_s27, %s239_s28  ;;  %p245_p9 = scmp.lt.s32.totalorder %s239_s28, %s239_s28 }
  0x6a   :  { %p246_p10 = por %p245_p9, %p244_p8 }
  0x6c   :  { %p247_p11 = pnand %p246_p10, %p240_p7 }
  0xe5   :  { %v127_v47 = vpop.xlane.xlu0 %126 }
  0xe9   :  { %v132_v48 = vpop.xlane.xlu0 %131 }
  0xea   :  { %v134_v49 = vsel %vm133_vm1, %v127_v47, %v132_v48 }
  0xeb   :  { %136 = vst.msk [vmem:[#allocation9] sm:$0x3] %vm135_vm2, %v134_v49 }
  0xec   :  { %250 = shalt.err (!%p247_p11)
}
  0xed   :  { %s251_s4 = scalar_lea.hbm %s355_s5, 32 }
  0xee   :  { %p252_p12 = scmp.ne.s32.totalorder %s355_s5, %s251_s4  ;;  %p255_p13 = scmp.lt.u32.totalorder %s251_s4, %s355_s5 }
  0xf0   :  { %p257_p0 = pnand %p255_p13, %p252_p12 }
  0xf2   :  { %260 = shalt.err (!%p257_p0)
}
  0xf3   :  { %156 = dma.vmem_to_hbm [thread:$0]  %s154_s27, 32, %s355_s5, [#allocation10]  }
  0xf4   :  { %265 = dma.done.wait [#allocation5], 32  }
  0xf5   :  { %266 = vsyncadd [#allocation5], 4294967264 }
  0xf6   :  { %267 = dma.done.wait [#allocation10], 32  }
  0xf7   :  { %268 = vsyncadd [#allocation10], 4294967264 }
  0xf8   :  { %163 = vsyncpa [#allocation4], 1 }
  0xf9   :  { %164 = vsyncpa [#allocation5], 1 }
  0xfa   :  { %165 = vsyncpa [#allocation10], 1 }
  0xfb   :  { %166 = vsyncpa [#allocation6], 1 }

</bundles_post_ra>
